<compile_context>
chip_gen: v6e
topology: v6e:2x2x1
jax: 0.10.0
libtpu: 0.0.40
codegen_flags: <defaults>
</compile_context>

<pallas_src>
import functools

import jax
import jax.numpy as jnp
from jax.experimental import pallas as pl
from jax.experimental.pallas import tpu as pltpu

LANE = 128  # vreg lane width -> feature dims padded to this (lane-dense stores)


def _round_up(x, m):
    return ((x + m - 1) // m) * m


def _sublane(dtype):
    # Rows packed per vreg sublane group: 8 for f32, 16 for bf16, 32 for int8/fp8.
    return max(8, 32 // jnp.dtype(dtype).itemsize)


def _vmem_capacity_bytes():
    try:
        return int(pltpu.get_tpu_info().vmem_capacity_bytes)
    except Exception:
        return 64 << 20  # conservative (v7x per-TC) fallback


# ----------------------------------------------------------------------------
# Kernel body
# ----------------------------------------------------------------------------
def _make_mlp_kernel(n_layers, precision):
    """Kernel for an MLP with `n_layers` fused linear layers (tanh between)."""

    def kernel(*refs):
        # refs = (x_ref, w0_ref, b0_ref, w1_ref, b1_ref, ..., o_ref)
        x_ref = refs[0]
        o_ref = refs[-1]
        p = refs[1:-1]

        h = x_ref[...]                                   # native dtype -> MXU directly
        for i in range(n_layers):
            w = p[2 * i][...]                            # (in_pad, out_pad)
            b = p[2 * i + 1][...].astype(jnp.float32)    # (1, out_pad) bias in f32
            acc = jnp.dot(h, w, precision=precision,
                          preferred_element_type=jnp.float32) + b
            if i < n_layers - 1:
                h = jnp.tanh(acc).astype(w.dtype)        # EUP tanh, narrow for next MXU pass
            else:
                h = acc                                  # no activation on last layer
        o_ref[...] = h.astype(o_ref.dtype)

    return kernel


# ----------------------------------------------------------------------------
# One-time parameter preparation (padding / optional cast) — NOT per call.
# ----------------------------------------------------------------------------
def prepare_params(params, compute_dtype=None):
    """Pad (and optionally cast) weights/biases once, outside the jitted path.

    params: list of (W, b) with W shaped (in, out) (transposed from PyTorch's
            (out, in) nn.Linear layout) and b shaped (out,) or (1, out).
    Returns (flat, dims_pad, out_dim) for fully_connected_nn_forward.
    """
    dims = [int(params[0][0].shape[0])] + [int(w.shape[1]) for w, _ in params]
    dims_pad = tuple(_round_up(d, LANE) for d in dims)
    flat = []
    for i, (w, b) in enumerate(params):
        w = jnp.asarray(w)
        b = jnp.reshape(jnp.asarray(b), (1, -1))
        if compute_dtype is not None:
            w = w.astype(compute_dtype)
            b = b.astype(compute_dtype)
        wp = jnp.pad(w, ((0, dims_pad[i] - w.shape[0]),
                         (0, dims_pad[i + 1] - w.shape[1])))
        bp = jnp.pad(b, ((0, 0), (0, dims_pad[i + 1] - b.shape[1])))
        flat += [wp, bp]
    flat = tuple(jax.block_until_ready(a) for a in flat)   # materialize padded copies now
    return flat, dims_pad, int(dims[-1])


# ----------------------------------------------------------------------------
# Generation-aware tiling / VMEM budgeting
# ----------------------------------------------------------------------------
def _pick_tiling(batch, dims_pad, dtype, tile_b, single_buffer_weights):
    n_layers = len(dims_pad) - 1
    itemsize = jnp.dtype(dtype).itemsize
    sb = _sublane(dtype)
    cap = _vmem_capacity_bytes()
    budget = min(cap * 3 // 4, 100 << 20)   # ~48 MiB on v7x, ~96 MiB on v5e/v6e

    wbuf = 1 if single_buffer_weights else 2
    weight_bytes = wbuf * sum((dims_pad[i] * dims_pad[i + 1] + dims_pad[i + 1]) * itemsize
                              for i in range(n_layers))
    max_d = max(dims_pad)

    def need(tb):
        io = 2 * tb * (dims_pad[0] + dims_pad[-1]) * itemsize   # double-buffered x/out tiles
        interm = 2 * tb * max_d * 4                             # f32 accumulator + tanh temp
        return weight_bytes + io + interm

    target = tile_b if tile_b is not None else (1024 if cap >= (100 << 20) else 512)
    tb = _round_up(min(int(target), batch), sb)
    if tb >= batch:
        tb = batch                          # one full-extent block; no masking needed
    while tb > sb and need(tb) > budget:
        tb = max(sb, _round_up(tb // 2, sb))
    # TODO(synk): if weight_bytes alone exceeds the budget (very wide layers,
    # hits v7x first), tile the widest layer over a second "arbitrary" grid
    # axis / split into two pallas_calls instead of fully resident weights.
    vmem_limit = min(int(need(tb) * 1.25) + (4 << 20), min(cap, 100 << 20))
    return int(tb), int(vmem_limit)


# ----------------------------------------------------------------------------
# Jitted forward
# ----------------------------------------------------------------------------
@functools.partial(jax.jit,
                   static_argnames=("dims_pad", "out_dim", "tile_b", "vmem_limit",
                                    "single_buffer_weights", "precision"))
def _forward(x, flat, *, dims_pad, out_dim, tile_b, vmem_limit,
             single_buffer_weights, precision):
    n_layers = len(flat) // 2
    batch, d_in = x.shape
    dtype = flat[0].dtype
    x = x.astype(dtype)
    if d_in < dims_pad[0]:
        # Feature-only pad (cheap). The batch dim is NOT padded: the partial
        # last tile is masked by Pallas and its garbage rows are row-local.
        x = jnp.pad(x, ((0, 0), (0, dims_pad[0] - d_in)))

    tb = tile_b
    grid = (pl.cdiv(batch, tb),)

    def resident_spec(shape):
        # Constant block index -> DMA'd once, VMEM-resident across the grid.
        # Single-buffered so it occupies 1x (not 2x) VMEM.
        if single_buffer_weights:
            return pl.BlockSpec(shape, lambda i: (0, 0), pipeline_mode=pl.Buffered(1))
        return pl.BlockSpec(shape, lambda i: (0, 0))

    in_specs = [pl.BlockSpec((tb, dims_pad[0]), lambda i: (i, 0))]
    for li in range(n_layers):
        in_specs.append(resident_spec((dims_pad[li], dims_pad[li + 1])))
        in_specs.append(resident_spec((1, dims_pad[li + 1])))
    out_spec = pl.BlockSpec((tb, dims_pad[-1]), lambda i: (i, 0))

    itemsize = jnp.dtype(dtype).itemsize
    flops = 2 * batch * sum(dims_pad[i] * dims_pad[i + 1] for i in range(n_layers))
    transcendentals = batch * sum(dims_pad[1:-1])
    weight_bytes = sum(int(a.size) * a.dtype.itemsize for a in flat)
    bytes_accessed = (batch * dims_pad[0] * itemsize + weight_bytes
                      + batch * dims_pad[-1] * itemsize)

    out = pl.pallas_call(
        _make_mlp_kernel(n_layers, precision),
        out_shape=jax.ShapeDtypeStruct((batch, dims_pad[-1]), dtype),
        grid=grid,
        in_specs=in_specs,
        out_specs=out_spec,
        compiler_params=pltpu.CompilerParams(
            dimension_semantics=("parallel",),   # batch tiles shard across TCs on v7x
            vmem_limit_bytes=vmem_limit),
        cost_estimate=pl.CostEstimate(
            flops=int(flops),
            transcendentals=int(transcendentals),
            bytes_accessed=int(bytes_accessed)),
    )(x, *flat)

    return out[:, :out_dim]      # slice off lane padding of the output features


# ----------------------------------------------------------------------------
# Public wrapper (with cached Buffered(1) support probe)
# ----------------------------------------------------------------------------
_SINGLE_BUFFER_OK = None   # lazily probed: does this JAX accept pl.Buffered(1)?


def fully_connected_nn_forward(x, prepared, *, tile_b=None, precision=None):
    """Forward pass of FullyConnectedNN.

    x:        (batch, in_dim)
    prepared: output of prepare_params(params[, compute_dtype]).
    For best throughput stack many pyMOR parameter samples into one batch; on
    v7x choose batch >= 2*tile_b so the "parallel" grid spans both TensorCores.
    """
    global _SINGLE_BUFFER_OK
    flat, dims_pad, out_dim = prepared
    batch = int(x.shape[0])
    dtype = flat[0].dtype

    candidates = (True, False) if _SINGLE_BUFFER_OK is None else (_SINGLE_BUFFER_OK,)
    last_err = None
    for single in candidates:
        tb, vmem_limit = _pick_tiling(batch, dims_pad, dtype, tile_b, single)
        try:
            out = _forward(x, flat, dims_pad=dims_pad, out_dim=out_dim,
                           tile_b=tb, vmem_limit=vmem_limit,
                           single_buffer_weights=single, precision=precision)
            if _SINGLE_BUFFER_OK is None:
                out = jax.block_until_ready(out)   # only the first (probe) call blocks
                _SINGLE_BUFFER_OK = single
            return out
        except Exception as e:   # e.g. pipeline_mode unsupported -> retry double-buffered
            last_err = e
    raise last_err


# ----------------------------------------------------------------------------
# Reference + init helpers
# ----------------------------------------------------------------------------
def init_params(key, layer_sizes, dtype=jnp.float32):
    """Deterministic init matching nn.Linear shapes (weights pre-transposed to (in, out))."""
    params = []
    for i in range(len(layer_sizes) - 1):
        fan_in, fan_out = int(layer_sizes[i]), int(layer_sizes[i + 1])
        key, kw, kb = jax.random.split(key, 3)
        bound = 1.0 / jnp.sqrt(fan_in)   # PyTorch default uniform(-1/sqrt(in), 1/sqrt(in))
        w = jax.random.uniform(kw, (fan_in, fan_out), dtype, -bound, bound)
        b = jax.random.uniform(kb, (1, fan_out), dtype, -bound, bound)
        params.append((w, b))
    return params


def reference_forward(x, params):
    h = x.astype(jnp.float32)
    for i, (w, b) in enumerate(params):
        h = h @ w.astype(jnp.float32) + b.astype(jnp.float32)
        if i < len(params) - 1:
            h = jnp.tanh(h)
    return h


if __name__ == "__main__":
    key = jax.random.PRNGKey(0)
    layer_sizes = [16, 64, 32, 8]   # input_dimension=16, output_dimension=8
    batch = 8

    kx, kp = jax.random.split(key)
    x = jax.random.normal(kx, (batch, layer_sizes[0]), jnp.float32)
    params = init_params(kp, layer_sizes)

    prepared = prepare_params(params)            # pad weights/biases ONCE
    out = fully_connected_nn_forward(x, prepared)
    out = jax.block_until_ready(out)

    ref = reference_forward(x, params)
    assert out.shape == (batch, layer_sizes[-1])
    assert jnp.allclose(out.astype(jnp.float32), ref, atol=1e-5, rtol=1e-5), \
        "mismatch vs reference"

    print("KERNEL_OK")
</pallas_src>

<mosaic_0001>
module attributes {stable_mosaic.version = 11 : i64} {
  func.func @kernel(%arg0: i32, %arg1: memref<8x128xf32, #tpu.memory_space<vmem>>, %arg2: memref<128x128xf32, #tpu.memory_space<vmem>>, %arg3: memref<1x128xf32, #tpu.memory_space<vmem>>, %arg4: memref<128x128xf32, #tpu.memory_space<vmem>>, %arg5: memref<1x128xf32, #tpu.memory_space<vmem>>, %arg6: memref<128x128xf32, #tpu.memory_space<vmem>>, %arg7: memref<1x128xf32, #tpu.memory_space<vmem>>, %arg8: memref<8x128xf32, #tpu.memory_space<vmem>>) attributes {dimension_semantics = [#tpu.dimension_semantics<parallel>], iteration_bounds = array<i64: 1>, scalar_prefetch = 0 : i64, scratch_operands = 0 : i64, tpu.core_type = #tpu.core_type<tc>, window_params = [{transform_indices = @transform_0, window_bounds = array<i64: 8, 128>}, {pipeline_mode = #tpu.pipeline_mode<synchronous>, transform_indices = @transform_1, window_bounds = array<i64: 128, 128>}, {pipeline_mode = #tpu.pipeline_mode<synchronous>, transform_indices = @transform_2, window_bounds = array<i64: 1, 128>}, {pipeline_mode = #tpu.pipeline_mode<synchronous>, transform_indices = @transform_3, window_bounds = array<i64: 128, 128>}, {pipeline_mode = #tpu.pipeline_mode<synchronous>, transform_indices = @transform_4, window_bounds = array<i64: 1, 128>}, {pipeline_mode = #tpu.pipeline_mode<synchronous>, transform_indices = @transform_5, window_bounds = array<i64: 128, 128>}, {pipeline_mode = #tpu.pipeline_mode<synchronous>, transform_indices = @transform_6, window_bounds = array<i64: 1, 128>}, {transform_indices = @transform_7, window_bounds = array<i64: 8, 128>}]} {
    %c0 = arith.constant 0 : index
    %c0_0 = arith.constant 0 : index
    %0 = vector.load %arg1[%c0, %c0_0] : memref<8x128xf32, #tpu.memory_space<vmem>>, vector<8x128xf32>
    %c0_1 = arith.constant 0 : index
    %c0_2 = arith.constant 0 : index
    %1 = vector.load %arg2[%c0_1, %c0_2] : memref<128x128xf32, #tpu.memory_space<vmem>>, vector<128x128xf32>
    %c0_3 = arith.constant 0 : index
    %c0_4 = arith.constant 0 : index
    %2 = vector.load %arg3[%c0_3, %c0_4] : memref<1x128xf32, #tpu.memory_space<vmem>>, vector<1x128xf32>
    %cst = arith.constant dense<0.000000e+00> : vector<8x128xf32>
    %3 = tpu.matmul %0, %1, %cst {dimension_numbers = #tpu.dot_dimension_numbers<[1], [0], [0], [1], [0, 0, 1, 1], [], []>} : vector<8x128xf32>, vector<128x128xf32>, vector<8x128xf32> -> vector<8x128xf32>
    %4 = vector.broadcast %2 : vector<1x128xf32> to vector<8x128xf32>
    %5 = arith.addf %3, %4 : vector<8x128xf32>
    %6 = math.tanh %5 : vector<8x128xf32>
    %c0_5 = arith.constant 0 : index
    %c0_6 = arith.constant 0 : index
    %7 = vector.load %arg4[%c0_5, %c0_6] : memref<128x128xf32, #tpu.memory_space<vmem>>, vector<128x128xf32>
    %c0_7 = arith.constant 0 : index
    %c0_8 = arith.constant 0 : index
    %8 = vector.load %arg5[%c0_7, %c0_8] : memref<1x128xf32, #tpu.memory_space<vmem>>, vector<1x128xf32>
    %cst_9 = arith.constant dense<0.000000e+00> : vector<8x128xf32>
    %9 = tpu.matmul %6, %7, %cst_9 {dimension_numbers = #tpu.dot_dimension_numbers<[1], [0], [0], [1], [0, 0, 1, 1], [], []>} : vector<8x128xf32>, vector<128x128xf32>, vector<8x128xf32> -> vector<8x128xf32>
    %10 = vector.broadcast %8 : vector<1x128xf32> to vector<8x128xf32>
    %11 = arith.addf %9, %10 : vector<8x128xf32>
    %12 = math.tanh %11 : vector<8x128xf32>
    %c0_10 = arith.constant 0 : index
    %c0_11 = arith.constant 0 : index
    %13 = vector.load %arg6[%c0_10, %c0_11] : memref<128x128xf32, #tpu.memory_space<vmem>>, vector<128x128xf32>
    %c0_12 = arith.constant 0 : index
    %c0_13 = arith.constant 0 : index
    %14 = vector.load %arg7[%c0_12, %c0_13] : memref<1x128xf32, #tpu.memory_space<vmem>>, vector<1x128xf32>
    %cst_14 = arith.constant dense<0.000000e+00> : vector<8x128xf32>
    %15 = tpu.matmul %12, %13, %cst_14 {dimension_numbers = #tpu.dot_dimension_numbers<[1], [0], [0], [1], [0, 0, 1, 1], [], []>} : vector<8x128xf32>, vector<128x128xf32>, vector<8x128xf32> -> vector<8x128xf32>
    %16 = vector.broadcast %14 : vector<1x128xf32> to vector<8x128xf32>
    %17 = arith.addf %15, %16 : vector<8x128xf32>
    %c0_15 = arith.constant 0 : index
    %c0_16 = arith.constant 0 : index
    %18 = vector.load %arg8[%c0_15, %c0_16] : memref<8x128xf32, #tpu.memory_space<vmem>>, vector<8x128xf32>
    tpu.vector_store %arg8[%c0_15, %c0_16], %17 {strides = array<i32>} : memref<8x128xf32, #tpu.memory_space<vmem>>, vector<8x128xf32>,
    return
  }
  func.func @transform_0(%arg0: i32) -> (i32, i32) {
    %c0_i32 = arith.constant 0 : i32
    %c0_i32_0 = arith.constant 0 : i32
    return %arg0, %c0_i32 : i32, i32
  }
  func.func @transform_1(%arg0: i32) -> (i32, i32) {
    %c0_i32 = arith.constant 0 : i32
    %c0_i32_0 = arith.constant 0 : i32
    %c0_i32_1 = arith.constant 0 : i32
    return %c0_i32, %c0_i32_0 : i32, i32
  }
  func.func @transform_2(%arg0: i32) -> (i32, i32) {
    %c0_i32 = arith.constant 0 : i32
    %c0_i32_0 = arith.constant 0 : i32
    %c0_i32_1 = arith.constant 0 : i32
    return %c0_i32, %c0_i32_0 : i32, i32
  }
  func.func @transform_3(%arg0: i32) -> (i32, i32) {
    %c0_i32 = arith.constant 0 : i32
    %c0_i32_0 = arith.constant 0 : i32
    %c0_i32_1 = arith.constant 0 : i32
    return %c0_i32, %c0_i32_0 : i32, i32
  }
  func.func @transform_4(%arg0: i32) -> (i32, i32) {
    %c0_i32 = arith.constant 0 : i32
    %c0_i32_0 = arith.constant 0 : i32
    %c0_i32_1 = arith.constant 0 : i32
    return %c0_i32, %c0_i32_0 : i32, i32
  }
  func.func @transform_5(%arg0: i32) -> (i32, i32) {
    %c0_i32 = arith.constant 0 : i32
    %c0_i32_0 = arith.constant 0 : i32
    %c0_i32_1 = arith.constant 0 : i32
    return %c0_i32, %c0_i32_0 : i32, i32
  }
  func.func @transform_6(%arg0: i32) -> (i32, i32) {
    %c0_i32 = arith.constant 0 : i32
    %c0_i32_0 = arith.constant 0 : i32
    %c0_i32_1 = arith.constant 0 : i32
    return %c0_i32, %c0_i32_0 : i32, i32
  }
  func.func @transform_7(%arg0: i32) -> (i32, i32) {
    %c0_i32 = arith.constant 0 : i32
    %c0_i32_0 = arith.constant 0 : i32
    return %arg0, %c0_i32 : i32, i32
  }
}

module attributes {stable_mosaic.version = 11 : i64} {
  func.func @kernel(%arg0: i32, %arg1: memref<8x128xf32, #tpu.memory_space<vmem>>, %arg2: memref<128x128xf32, #tpu.memory_space<vmem>>, %arg3: memref<1x128xf32, #tpu.memory_space<vmem>>, %arg4: memref<128x128xf32, #tpu.memory_space<vmem>>, %arg5: memref<1x128xf32, #tpu.memory_space<vmem>>, %arg6: memref<128x128xf32, #tpu.memory_space<vmem>>, %arg7: memref<1x128xf32, #tpu.memory_space<vmem>>, %arg8: memref<8x128xf32, #tpu.memory_space<vmem>>) attributes {dimension_semantics = [#tpu.dimension_semantics<parallel>], iteration_bounds = array<i64: 1>, scalar_prefetch = 0 : i64, scratch_operands = 0 : i64, tpu.core_type = #tpu.core_type<tc>, window_params = [{transform_indices = @transform_0, window_bounds = array<i64: 8, 128>}, {pipeline_mode = #tpu.pipeline_mode<synchronous>, transform_indices = @transform_1, window_bounds = array<i64: 128, 128>}, {pipeline_mode = #tpu.pipeline_mode<synchronous>, transform_indices = @transform_2, window_bounds = array<i64: 1, 128>}, {pipeline_mode = #tpu.pipeline_mode<synchronous>, transform_indices = @transform_3, window_bounds = array<i64: 128, 128>}, {pipeline_mode = #tpu.pipeline_mode<synchronous>, transform_indices = @transform_4, window_bounds = array<i64: 1, 128>}, {pipeline_mode = #tpu.pipeline_mode<synchronous>, transform_indices = @transform_5, window_bounds = array<i64: 128, 128>}, {pipeline_mode = #tpu.pipeline_mode<synchronous>, transform_indices = @transform_6, window_bounds = array<i64: 1, 128>}, {transform_indices = @transform_7, window_bounds = array<i64: 8, 128>}]} {
    %c0 = arith.constant 0 : index
    %c0_0 = arith.constant 0 : index
    %0 = vector.load %arg1[%c0, %c0_0] : memref<8x128xf32, #tpu.memory_space<vmem>>, vector<8x128xf32>
    %c0_1 = arith.constant 0 : index
    %c0_2 = arith.constant 0 : index
    %1 = vector.load %arg2[%c0_1, %c0_2] : memref<128x128xf32, #tpu.memory_space<vmem>>, vector<128x128xf32>
    %c0_3 = arith.constant 0 : index
    %c0_4 = arith.constant 0 : index
    %2 = vector.load %arg3[%c0_3, %c0_4] : memref<1x128xf32, #tpu.memory_space<vmem>>, vector<1x128xf32>
    %cst = arith.constant dense<0.000000e+00> : vector<8x128xf32>
    %3 = tpu.matmul %0, %1, %cst {dimension_numbers = #tpu.dot_dimension_numbers<[1], [0], [0], [1], [0, 0, 1, 1], [], []>} : vector<8x128xf32>, vector<128x128xf32>, vector<8x128xf32> -> vector<8x128xf32>
    %4 = vector.broadcast %2 : vector<1x128xf32> to vector<8x128xf32>
    %5 = arith.addf %3, %4 : vector<8x128xf32>
    %6 = math.tanh %5 : vector<8x128xf32>
    %c0_5 = arith.constant 0 : index
    %c0_6 = arith.constant 0 : index
    %7 = vector.load %arg4[%c0_5, %c0_6] : memref<128x128xf32, #tpu.memory_space<vmem>>, vector<128x128xf32>
    %c0_7 = arith.constant 0 : index
    %c0_8 = arith.constant 0 : index
    %8 = vector.load %arg5[%c0_7, %c0_8] : memref<1x128xf32, #tpu.memory_space<vmem>>, vector<1x128xf32>
    %cst_9 = arith.constant dense<0.000000e+00> : vector<8x128xf32>
    %9 = tpu.matmul %6, %7, %cst_9 {dimension_numbers = #tpu.dot_dimension_numbers<[1], [0], [0], [1], [0, 0, 1, 1], [], []>} : vector<8x128xf32>, vector<128x128xf32>, vector<8x128xf32> -> vector<8x128xf32>
    %10 = vector.broadcast %8 : vector<1x128xf32> to vector<8x128xf32>
    %11 = arith.addf %9, %10 : vector<8x128xf32>
    %12 = math.tanh %11 : vector<8x128xf32>
    %c0_10 = arith.constant 0 : index
    %c0_11 = arith.constant 0 : index
    %13 = vector.load %arg6[%c0_10, %c0_11] : memref<128x128xf32, #tpu.memory_space<vmem>>, vector<128x128xf32>
    %c0_12 = arith.constant 0 : index
    %c0_13 = arith.constant 0 : index
    %14 = vector.load %arg7[%c0_12, %c0_13] : memref<1x128xf32, #tpu.memory_space<vmem>>, vector<1x128xf32>
    %cst_14 = arith.constant dense<0.000000e+00> : vector<8x128xf32>
    %15 = tpu.matmul %12, %13, %cst_14 {dimension_numbers = #tpu.dot_dimension_numbers<[1], [0], [0], [1], [0, 0, 1, 1], [], []>} : vector<8x128xf32>, vector<128x128xf32>, vector<8x128xf32> -> vector<8x128xf32>
    %16 = vector.broadcast %14 : vector<1x128xf32> to vector<8x128xf32>
    %17 = arith.addf %15, %16 : vector<8x128xf32>
    %c0_15 = arith.constant 0 : index
    %c0_16 = arith.constant 0 : index
    %18 = vector.load %arg8[%c0_15, %c0_16] : memref<8x128xf32, #tpu.memory_space<vmem>>, vector<8x128xf32>
    tpu.vector_store %arg8[%c0_15, %c0_16], %17 {strides = array<i32>} : memref<8x128xf32, #tpu.memory_space<vmem>>, vector<8x128xf32>,
    return
  }
  func.func @transform_0(%arg0: i32) -> (i32, i32) {
    %c0_i32 = arith.constant 0 : i32
    %c0_i32_0 = arith.constant 0 : i32
    return %arg0, %c0_i32 : i32, i32
  }
  func.func @transform_1(%arg0: i32) -> (i32, i32) {
    %c0_i32 = arith.constant 0 : i32
    %c0_i32_0 = arith.constant 0 : i32
    %c0_i32_1 = arith.constant 0 : i32
    return %c0_i32, %c0_i32_0 : i32, i32
  }
  func.func @transform_2(%arg0: i32) -> (i32, i32) {
    %c0_i32 = arith.constant 0 : i32
    %c0_i32_0 = arith.constant 0 : i32
    %c0_i32_1 = arith.constant 0 : i32
    return %c0_i32, %c0_i32_0 : i32, i32
  }
  func.func @transform_3(%arg0: i32) -> (i32, i32) {
    %c0_i32 = arith.constant 0 : i32
    %c0_i32_0 = arith.constant 0 : i32
    %c0_i32_1 = arith.constant 0 : i32
    return %c0_i32, %c0_i32_0 : i32, i32
  }
  func.func @transform_4(%arg0: i32) -> (i32, i32) {
    %c0_i32 = arith.constant 0 : i32
    %c0_i32_0 = arith.constant 0 : i32
    %c0_i32_1 = arith.constant 0 : i32
    return %c0_i32, %c0_i32_0 : i32, i32
  }
  func.func @transform_5(%arg0: i32) -> (i32, i32) {
    %c0_i32 = arith.constant 0 : i32
    %c0_i32_0 = arith.constant 0 : i32
    %c0_i32_1 = arith.constant 0 : i32
    return %c0_i32, %c0_i32_0 : i32, i32
  }
  func.func @transform_6(%arg0: i32) -> (i32, i32) {
    %c0_i32 = arith.constant 0 : i32
    %c0_i32_0 = arith.constant 0 : i32
    %c0_i32_1 = arith.constant 0 : i32
    return %c0_i32, %c0_i32_0 : i32, i32
  }
  func.func @transform_7(%arg0: i32) -> (i32, i32) {
    %c0_i32 = arith.constant 0 : i32
    %c0_i32_0 = arith.constant 0 : i32
    return %arg0, %c0_i32 : i32, i32
  }
}

</mosaic_0001>

<bundles_post_ra>
// kernel: _forward.1
= control target key start
LH: loop header
LB: loop body
LE: loop exit
PB: predicated region body
PF: predicated region fallthrough
CT: control target
= control target key end

     0   :  { %12 = vsyncpa [#allocation3], 0  ;;  %s750_s0 = inlined_call_operand.vmem [shape: f32[8,128], index: 0, kind: input, shape index: {}]   ;;  %s751_s1 = inlined_call_operand.hbm [shape: f32[128,128], index: 1, kind: input, shape index: {}]   ;;  %s752_s2 = inlined_call_operand.vmem [shape: f32[1,128], index: 2, kind: input, shape index: {}]   ;;  %s753_s3 = inlined_call_operand.hbm [shape: f32[128,128], index: 3, kind: input, shape index: {}]   ;;  %s754_s4 = inlined_call_operand.vmem [shape: f32[1,128], index: 4, kind: input, shape index: {}]   ;;  %s755_s5 = inlined_call_operand.hbm [shape: f32[128,128], index: 5, kind: input, shape index: {}]   ;;  %s756_s6 = inlined_call_operand.vmem [shape: f32[1,128], index: 6, kind: input, shape index: {}]   ;;  %s757_s7 = inlined_call_operand.hbm [shape: f32[8,128], index: 7, kind: output, shape index: {}]  }
   0x1   :  { %13 = vsyncpa [#allocation6], 0 }
   0x2   :  { %14 = vsyncpa [#allocation4], 0  ;;  %s624_s24 = smov [#allocation5]   ;;  %s625_s26 = smov [#allocation2]  }
   0x3   :  { %s36_s25 = sshll.u32 %s624_s24, 4  ;;  %s22_s27 = sshll.u32 %s625_s26, 4  ;;  %s37_s25 = int_to_ptr.vmem [resolvable:$true] %s36_s25  ;;  %s23_s27 = int_to_ptr.vmem [resolvable:$true] %s22_s27 }
   0x4   :  { %s546_s28 = scalar_lea.vmem %s37_s25, 2048  ;;  %p551_p1 = scmp.lt.s32.totalorder %s37_s25, %s37_s25 }
   0x5   :  { %p547_p0 = scmp.ne.s32.totalorder %s37_s25, %s546_s28  ;;  %p552_p2 = scmp.lt.s32.totalorder %s546_s28, %s546_s28 }
   0x7   :  { %p553_p3 = por %p552_p2, %p551_p1 }
   0x9   :  { %p554_p4 = pnand %p553_p3, %p547_p0 }
   0xb   :  { %557 = shalt.err (!%p554_p4)
}
   0xc   :  { %s626_s29 = smov 128   ;;  %s627_s30 = smov 8  }
   0xd   :  { %42 = dma.hbm_to_vmem [thread:$0]  %s753_s3, 2048, %s37_s25, [#allocation6], %s626_s29, %s626_s29, %s627_s30  }
   0xe   :  { %s566_s10 = scalar_lea.vmem %s23_s27, 2048  ;;  %p571_p6 = scmp.lt.s32.totalorder %s23_s27, %s23_s27 }
   0xf   :  { %p567_p5 = scmp.ne.s32.totalorder %s23_s27, %s566_s10  ;;  %p572_p7 = scmp.lt.s32.totalorder %s566_s10, %s566_s10 }
  0x11   :  { %p573_p8 = por %p572_p7, %p571_p6 }
  0x13   :  { %p574_p9 = pnand %p573_p8, %p567_p5 }
  0x15   :  { %577 = shalt.err (!%p574_p9)
}
  0x16   :  { %28 = dma.hbm_to_vmem [thread:$0]  %s751_s1, 2048, %s23_s27, [#allocation3], %s626_s29, %s626_s29, %s627_s30  }
  0x17   :  { %s628_s13 = smov [#allocation7]  }
  0x18   :  { %s50_s14 = sshll.u32 %s628_s13, 4  ;;  %s51_s14 = int_to_ptr.vmem [resolvable:$true] %s50_s14 }
  0x19   :  { %s586_s15 = scalar_lea.vmem %s51_s14, 2048  ;;  %p591_p11 = scmp.lt.s32.totalorder %s51_s14, %s51_s14 }
  0x1a   :  { %p587_p10 = scmp.ne.s32.totalorder %s51_s14, %s586_s15  ;;  %p592_p12 = scmp.lt.s32.totalorder %s586_s15, %s586_s15 }
  0x1c   :  { %p593_p13 = por %p592_p12, %p591_p11 }
  0x1e   :  { %p594_p0 = pnand %p593_p13, %p587_p10 }
  0x20   :  { %597 = shalt.err (!%p594_p0)
}
  0x21   :  { %56 = dma.hbm_to_vmem [thread:$0]  %s755_s5, 2048, %s51_s14, [#allocation6], %s626_s29, %s626_s29, %s627_s30  }
  0x22   :  { %618 = dma.done.wait [#allocation3], 2048  }
  0x23   :  { %619 = vsyncadd [#allocation3], 4294965248 }
  0x24   :  { %620 = dma.done.wait [#allocation6], 4096  }
  0x25   :  { %621 = vsyncadd [#allocation6], 4294963200  ;;  %v629_v0 = vmov 0.0   ;;  %vm630_vm0 = vmmov 0   ;;  %v84_v1 = vld [vmem:[#allocation2 + $0x78] sm:$0xff]  ;;  %v83_v2 = vld [vmem:[#allocation2 + $0x70] sm:$0xff] }
  0x26   :  { %421 = vmatprep.subr.mxu0 %v629_v0  ;;  %453 = vmatprep.mubr.msk.f32.mxu0 %vm630_vm0, %v629_v0  ;;  %v82_v3 = vld [vmem:[#allocation2 + $0x68] sm:$0xff]  ;;  %v81_v4 = vld [vmem:[#allocation2 + $0x60] sm:$0xff]  ;;  %v178_v5 = vld [vmem:[#allocation5 + $0x78] sm:$0xff]  ;;  %s631_s21 = smov [#allocation8]  }
  0x27   :  { %456 = vmatprep.subr.mxu1 %v629_v0  ;;  %488 = vmatprep.mubr.msk.f32.mxu1 %vm630_vm0, %v629_v0  ;;  %v80_v6 = vld [vmem:[#allocation2 + $0x58] sm:$0xff]  ;;  %v177_v7 = vld [vmem:[#allocation5 + $0x70] sm:$0xff]  ;;  %v176_v8 = vld [vmem:[#allocation5 + $0x68] sm:$0xff]  ;;  %s357_s22 = sshll.u32 %s631_s21, 4  ;;  %s358_s22 = int_to_ptr.vmem [resolvable:$true] %s357_s22 }
  0x28   :  { %422 = vmatpush3.msra.mxu0 %v84_v1  ;;  %457 = vmatpush3.msra.mxu1 %v178_v5  ;;  %v79_v9 = vld [vmem:[#allocation2 + $0x50] sm:$0xff]  ;;  %v175_v10 = vld [vmem:[#allocation5 + $0x60] sm:$0xff]  ;;  %v78_v11 = vld [vmem:[#allocation2 + $0x48] sm:$0xff]  ;;  %s598_s23 = scalar_lea.vmem %s358_s22, 128  ;;  %p603_p2 = scmp.lt.s32.totalorder %s358_s22, %s358_s22 }
  0x29   :  { %423 = vmatprep.subr.mxu0 %v629_v0  ;;  %458 = vmatprep.subr.mxu1 %v629_v0  ;;  %v174_v12 = vld [vmem:[#allocation5 + $0x58] sm:$0xff]  ;;  %v77_v13 = vld [vmem:[#allocation2 + $0x40] sm:$0xff]  ;;  %v173_v14 = vld [vmem:[#allocation5 + $0x50] sm:$0xff]  ;;  %p599_p1 = scmp.ne.s32.totalorder %s358_s22, %s598_s23  ;;  %p604_p3 = scmp.lt.s32.totalorder %s598_s23, %s598_s23 }
  0x2a   :  { %424 = vmatpush3.msra.mxu0 %v83_v2  ;;  %459 = vmatpush3.msra.mxu1 %v177_v7  ;;  %v76_v15 = vld [vmem:[#allocation2 + $0x38] sm:$0xff]  ;;  %v172_v16 = vld [vmem:[#allocation5 + $0x48] sm:$0xff]  ;;  %v75_v17 = vld [vmem:[#allocation2 + $0x30] sm:$0xff] }
  0x2b   :  { %425 = vmatprep.subr.mxu0 %v629_v0  ;;  %460 = vmatprep.subr.mxu1 %v629_v0  ;;  %v74_v18 = vld [vmem:[#allocation2 + $0x28] sm:$0xff]  ;;  %v73_v19 = vld [vmem:[#allocation2 + $0x20] sm:$0xff]  ;;  %v72_v20 = vld [vmem:[#allocation2 + $0x18] sm:$0xff]  ;;  %p605_p4 = por %p604_p3, %p603_p2 }
  0x2c   :  { %426 = vmatpush3.msra.mxu0 %v82_v3  ;;  %461 = vmatpush3.msra.mxu1 %v176_v8  ;;  %v71_v21 = vld [vmem:[#allocation2 + $0x10] sm:$0xff]  ;;  %v70_v22 = vld [vmem:[#allocation2 + $0x8] sm:$0xff]  ;;  %v69_v23 = vld [vmem:[#allocation2] sm:$0xff] }
  0x2d   :  { %427 = vmatprep.subr.mxu0 %v629_v0  ;;  %462 = vmatprep.subr.mxu1 %v629_v0  ;;  %v68_v24 = vld [vmem:[%s750_s0] sm:$0xff]  ;;  %v170_v26 = vld [vmem:[#allocation5 + $0x38] sm:$0xff]  ;;  %v169_v27 = vld [vmem:[#allocation5 + $0x30] sm:$0xff]  ;;  %p606_p5 = pnand %p605_p4, %p599_p1 }
  0x2e   :  { %428 = vmatpush3.msra.mxu0 %v81_v4  ;;  %463 = vmatpush3.msra.mxu1 %v175_v10  ;;  %v171_v25 = vld [vmem:[#allocation5 + $0x40] sm:$0xff]  ;;  %v168_v28 = vld [vmem:[#allocation5 + $0x28] sm:$0xff]  ;;  %v166_v30 = vld [vmem:[#allocation5 + $0x18] sm:$0xff] }
  0x2f   :  { %429 = vmatprep.subr.mxu0 %v629_v0  ;;  %464 = vmatprep.subr.mxu1 %v629_v0  ;;  %v167_v29 = vld [vmem:[#allocation5 + $0x20] sm:$0xff]  ;;  %v165_v31 = vld [vmem:[#allocation5 + $0x10] sm:$0xff]  ;;  %v164_v32 = vld [vmem:[#allocation5 + $0x8] sm:$0xff] }
  0x30   :  { %430 = vmatpush3.msra.mxu0 %v80_v6  ;;  %465 = vmatpush3.msra.mxu1 %v174_v12  ;;  %v163_v33 = vld [vmem:[#allocation5] sm:$0xff]  ;;  %v272_v34 = vld [vmem:[#allocation7 + $0x78] sm:$0xff]  ;;  %v271_v35 = vld [vmem:[#allocation7 + $0x70] sm:$0xff] }
  0x31   :  { %431 = vmatprep.subr.mxu0 %v629_v0  ;;  %466 = vmatprep.subr.mxu1 %v629_v0  ;;  %v270_v36 = vld [vmem:[#allocation7 + $0x68] sm:$0xff]  ;;  %v269_v37 = vld [vmem:[#allocation7 + $0x60] sm:$0xff]  ;;  %v268_v38 = vld [vmem:[#allocation7 + $0x58] sm:$0xff] }
  0x32   :  { %432 = vmatpush3.msra.mxu0 %v79_v9  ;;  %467 = vmatpush3.msra.mxu1 %v173_v14  ;;  %v267_v39 = vld [vmem:[#allocation7 + $0x50] sm:$0xff]  ;;  %v266_v40 = vld [vmem:[#allocation7 + $0x48] sm:$0xff]  ;;  %v367_v41 = vld [vmem:[%s752_s2] ss:$0 sm:$0xff] }
  0x33   :  { %433 = vmatprep.subr.mxu0 %v629_v0  ;;  %468 = vmatprep.subr.mxu1 %v629_v0  ;;  %v265_v46 = vld [vmem:[#allocation7 + $0x40] sm:$0xff]  ;;  %v264_v47 = vld [vmem:[#allocation7 + $0x38] sm:$0xff]  ;;  %v263_v48 = vld [vmem:[#allocation7 + $0x30] sm:$0xff] }
  0x34   :  { %434 = vmatpush3.msra.mxu0 %v78_v11  ;;  %469 = vmatpush3.msra.mxu1 %v172_v16  ;;  %v262_v49 = vld [vmem:[#allocation7 + $0x28] sm:$0xff]  ;;  %v261_v50 = vld [vmem:[#allocation7 + $0x20] sm:$0xff]  ;;  %v260_v51 = vld [vmem:[#allocation7 + $0x18] sm:$0xff] }
  0x35   :  { %435 = vmatprep.subr.mxu0 %v629_v0  ;;  %470 = vmatprep.subr.mxu1 %v629_v0  ;;  %v259_v52 = vld [vmem:[#allocation7 + $0x10] sm:$0xff]  ;;  %v258_v53 = vld [vmem:[#allocation7 + $0x8] sm:$0xff]  ;;  %v257_v54 = vld [vmem:[#allocation7] sm:$0xff] }
  0x36   :  { %436 = vmatpush3.msra.mxu0 %v77_v13  ;;  %471 = vmatpush3.msra.mxu1 %v171_v25  ;;  %v368_v55 = vld [vmem:[%s754_s4] ss:$0 sm:$0xff] }
  0x37   :  { %437 = vmatprep.subr.mxu0 %v629_v0  ;;  %472 = vmatprep.subr.mxu1 %v629_v0  ;;  %v369_v60 = vld [vmem:[%s756_s6] ss:$0 sm:$0xff] }
  0x38   :  { %438 = vmatpush3.msra.mxu0 %v76_v15  ;;  %473 = vmatpush3.msra.mxu1 %v170_v26 }
  0x39   :  { %439 = vmatprep.subr.mxu0 %v629_v0  ;;  %474 = vmatprep.subr.mxu1 %v629_v0 }
  0x3a   :  { %440 = vmatpush3.msra.mxu0 %v75_v17  ;;  %475 = vmatpush3.msra.mxu1 %v169_v27 }
  0x3b   :  { %441 = vmatprep.subr.mxu0 %v629_v0  ;;  %476 = vmatprep.subr.mxu1 %v629_v0 }
  0x3c   :  { %442 = vmatpush3.msra.mxu0 %v74_v18  ;;  %477 = vmatpush3.msra.mxu1 %v168_v28 }
  0x3d   :  { %443 = vmatprep.subr.mxu0 %v629_v0  ;;  %478 = vmatprep.subr.mxu1 %v629_v0 }
  0x3e   :  { %444 = vmatpush3.msra.mxu0 %v73_v19  ;;  %479 = vmatpush3.msra.mxu1 %v167_v29 }
  0x3f   :  { %445 = vmatprep.subr.mxu0 %v629_v0  ;;  %480 = vmatprep.subr.mxu1 %v629_v0 }
  0x40   :  { %446 = vmatpush3.msra.mxu0 %v72_v20  ;;  %481 = vmatpush3.msra.mxu1 %v166_v30 }
  0x41   :  { %447 = vmatprep.subr.mxu0 %v629_v0  ;;  %482 = vmatprep.subr.mxu1 %v629_v0 }
  0x42   :  { %448 = vmatpush3.msra.mxu0 %v71_v21  ;;  %483 = vmatpush3.msra.mxu1 %v165_v31 }
  0x43   :  { %449 = vmatprep.subr.mxu0 %v629_v0  ;;  %484 = vmatprep.subr.mxu1 %v629_v0 }
  0x44   :  { %450 = vmatpush3.msra.mxu0 %v70_v22  ;;  %485 = vmatpush3.msra.mxu1 %v164_v32 }
  0x45   :  { %451 = vmatprep.subr.mxu0 %v629_v0  ;;  %486 = vmatprep.subr.mxu1 %v629_v0 }
  0x46   :  { %452 = vmatpush3.msra.mxu0 %v69_v23  ;;  %487 = vmatpush3.msra.mxu1 %v163_v33 }
  0x47   :  { %454 = vmatmul.mubr.f32.vlgmr.msra.gmra.mxu0 %v68_v24  ;;  %491 = vmatprep.subr.mxu0 %v629_v0 }
  0x48   :  { %523 = vmatprep.mubr.msk.f32.mxu0 %vm630_vm0, %v629_v0  ;;  %492 = vmatpush3.msra.mxu0 %v272_v34 }
  0x49   :  { %493 = vmatprep.subr.mxu0 %v629_v0 }
  0x4a   :  { %494 = vmatpush3.msra.mxu0 %v271_v35 }
  0x4b   :  { %495 = vmatprep.subr.mxu0 %v629_v0 }
  0x4c   :  { %496 = vmatpush3.msra.mxu0 %v270_v36 }
  0x4d   :  { %497 = vmatprep.subr.mxu0 %v629_v0 }
  0x4e   :  { %498 = vmatpush3.msra.mxu0 %v269_v37 }
  0x4f   :  { %499 = vmatprep.subr.mxu0 %v629_v0 }
  0x50   :  { %500 = vmatpush3.msra.mxu0 %v268_v38 }
  0x51   :  { %501 = vmatprep.subr.mxu0 %v629_v0 }
  0x52   :  { %502 = vmatpush3.msra.mxu0 %v267_v39 }
  0x53   :  { %503 = vmatprep.subr.mxu0 %v629_v0 }
  0x54   :  { %504 = vmatpush3.msra.mxu0 %v266_v40 }
  0x55   :  { %505 = vmatprep.subr.mxu0 %v629_v0 }
  0x56   :  { %506 = vmatpush3.msra.mxu0 %v265_v46 }
  0x57   :  { %507 = vmatprep.subr.mxu0 %v629_v0 }
  0x58   :  { %508 = vmatpush3.msra.mxu0 %v264_v47 }
  0x59   :  { %509 = vmatprep.subr.mxu0 %v629_v0 }
  0x5a   :  { %510 = vmatpush3.msra.mxu0 %v263_v48 }
  0x5b   :  { %511 = vmatprep.subr.mxu0 %v629_v0 }
  0x5c   :  { %512 = vmatpush3.msra.mxu0 %v262_v49 }
  0x5d   :  { %513 = vmatprep.subr.mxu0 %v629_v0 }
  0x5e   :  { %514 = vmatpush3.msra.mxu0 %v261_v50 }
  0x5f   :  { %515 = vmatprep.subr.mxu0 %v629_v0 }
  0x60   :  { %516 = vmatpush3.msra.mxu0 %v260_v51 }
  0x61   :  { %517 = vmatprep.subr.mxu0 %v629_v0 }
  0x62   :  { %518 = vmatpush3.msra.mxu0 %v259_v52 }
  0x63   :  { %519 = vmatprep.subr.mxu0 %v629_v0 }
  0x64   :  { %520 = vmatpush3.msra.mxu0 %v258_v53 }
  0x65   :  { %521 = vmatprep.subr.mxu0 %v629_v0 }
  0x66   :  { %522 = vmatpush3.msra.mxu0 %v257_v54 }
 0x107   :  { %v158_v42 = vpop.f32.mrf.mxu0 }
 0x108   :  { %v159_v43 = vadd.f32 %v367_v41, %v158_v42 }
 0x109   :  { %v455_v44 = vpop.f32.mrf.mxu0 }
 0x10a   :  { %534 = vtanh.f32 %v159_v43 }
 0x117   :  { %v535_v45 = vpop.eup %534 }
 0x118   :  { %489 = vmatmul.mubr.f32.vlgmr.msra.gmra.mxu1 %v535_v45 }
 0x1d8   :  { %v252_v56 = vpop.f32.mrf.mxu1 }
 0x1d9   :  { %v253_v57 = vadd.f32 %v368_v55, %v252_v56 }
 0x1da   :  { %v490_v58 = vpop.f32.mrf.mxu1 }
 0x1db   :  { %536 = vtanh.f32 %v253_v57 }
 0x1e8   :  { %v537_v59 = vpop.eup %536 }
 0x1e9   :  { %524 = vmatmul.mubr.f32.vlgmr.msra.gmra.mxu0 %v537_v59 }
 0x2a9   :  { %v346_v61 = vpop.f32.mrf.mxu0 }
 0x2aa   :  { %v347_v62 = vadd.f32 %v369_v60, %v346_v61 }
 0x2ab   :  { %v525_v63 = vpop.f32.mrf.mxu0 }
 0x2ac   :  { %350 = vst [vmem:[#allocation8] sm:$0xff] %v347_v62 }
 0x2ad   :  { %609 = shalt.err (!%p606_p5)
}
 0x2ae   :  { %360 = dma.vmem_to_hbm [thread:$0]  %s358_s22, 128, %s757_s7, [#allocation4]  }
 0x2af   :  { %622 = dma.done.wait [#allocation4], 128  }
 0x2b0   :  { %623 = vsyncadd [#allocation4], 4294967168 }
 0x2b1   :  { %364 = vsyncpa [#allocation3], 1 }
 0x2b2   :  { %365 = vsyncpa [#allocation6], 1 }
 0x2b3   :  { %366 = vsyncpa [#allocation4], 1 }

// kernel: _forward.1
= control target key start
LH: loop header
LB: loop body
LE: loop exit
PB: predicated region body
PF: predicated region fallthrough
CT: control target
= control target key end

     0   :  { %12 = vsyncpa [#allocation3], 0  ;;  %s750_s0 = inlined_call_operand.vmem [shape: f32[8,128], index: 0, kind: input, shape index: {}]   ;;  %s751_s1 = inlined_call_operand.hbm [shape: f32[128,128], index: 1, kind: input, shape index: {}]   ;;  %s752_s2 = inlined_call_operand.vmem [shape: f32[1,128], index: 2, kind: input, shape index: {}]   ;;  %s753_s3 = inlined_call_operand.hbm [shape: f32[128,128], index: 3, kind: input, shape index: {}]   ;;  %s754_s4 = inlined_call_operand.vmem [shape: f32[1,128], index: 4, kind: input, shape index: {}]   ;;  %s755_s5 = inlined_call_operand.hbm [shape: f32[128,128], index: 5, kind: input, shape index: {}]   ;;  %s756_s6 = inlined_call_operand.vmem [shape: f32[1,128], index: 6, kind: input, shape index: {}]   ;;  %s757_s7 = inlined_call_operand.hbm [shape: f32[8,128], index: 7, kind: output, shape index: {}]  }
   0x1   :  { %13 = vsyncpa [#allocation6], 0 }
   0x2   :  { %14 = vsyncpa [#allocation4], 0  ;;  %s624_s24 = smov [#allocation5]   ;;  %s625_s26 = smov [#allocation2]  }
   0x3   :  { %s36_s25 = sshll.u32 %s624_s24, 4  ;;  %s22_s27 = sshll.u32 %s625_s26, 4  ;;  %s37_s25 = int_to_ptr.vmem [resolvable:$true] %s36_s25  ;;  %s23_s27 = int_to_ptr.vmem [resolvable:$true] %s22_s27 }
   0x4   :  { %s546_s28 = scalar_lea.vmem %s37_s25, 2048  ;;  %p551_p1 = scmp.lt.s32.totalorder %s37_s25, %s37_s25 }
   0x5   :  { %p547_p0 = scmp.ne.s32.totalorder %s37_s25, %s546_s28  ;;  %p552_p2 = scmp.lt.s32.totalorder %s546_s28, %s546_s28 }
   0x7   :  { %p553_p3 = por %p552_p2, %p551_p1 }
   0x9   :  { %p554_p4 = pnand %p553_p3, %p547_p0 }
   0xb   :  { %557 = shalt.err (!%p554_p4)
}
   0xc   :  { %s626_s29 = smov 128   ;;  %s627_s30 = smov 8  }
   0xd   :  { %42 = dma.hbm_to_vmem [thread:$0]  %s753_s3, 2048, %s37_s25, [#allocation6], %s626_s29, %s626_s29, %s627_s30  }
   0xe   :  { %s566_s10 = scalar_lea.vmem %s23_s27, 2048  ;;  %p571_p6 = scmp.lt.s32.totalorder %s23_s27, %s23_s27 }
   0xf   :  { %p567_p5 = scmp.ne.s32.totalorder %s23_s27, %s566_s10  ;;  %p572_p7 = scmp.lt.s32.totalorder %s566_s10, %s566_s10 }
  0x11   :  { %p573_p8 = por %p572_p7, %p571_p6 }
  0x13   :  { %p574_p9 = pnand %p573_p8, %p567_p5 }
  0x15   :  { %577 = shalt.err (!%p574_p9)
}
  0x16   :  { %28 = dma.hbm_to_vmem [thread:$0]  %s751_s1, 2048, %s23_s27, [#allocation3], %s626_s29, %s626_s29, %s627_s30  }
  0x17   :  { %s628_s13 = smov [#allocation7]  }
  0x18   :  { %s50_s14 = sshll.u32 %s628_s13, 4  ;;  %s51_s14 = int_to_ptr.vmem [resolvable:$true] %s50_s14 }
  0x19   :  { %s586_s15 = scalar_lea.vmem %s51_s14, 2048  ;;  %p591_p11 = scmp.lt.s32.totalorder %s51_s14, %s51_s14 }
  0x1a   :  { %p587_p10 = scmp.ne.s32.totalorder %s51_s14, %s586_s15  ;;  %p592_p12 = scmp.lt.s32.totalorder %s586_s15, %s586_s15 }
  0x1c   :  { %p593_p13 = por %p592_p12, %p591_p11 }
  0x1e   :  { %p594_p0 = pnand %p593_p13, %p587_p10 }
  0x20   :  { %597 = shalt.err (!%p594_p0)
}
  0x21   :  { %56 = dma.hbm_to_vmem [thread:$0]  %s755_s5, 2048, %s51_s14, [#allocation6], %s626_s29, %s626_s29, %s627_s30  }
  0x22   :  { %618 = dma.done.wait [#allocation3], 2048  }
  0x23   :  { %619 = vsyncadd [#allocation3], 4294965248 }
  0x24   :  { %620 = dma.done.wait [#allocation6], 4096  }
  0x25   :  { %621 = vsyncadd [#allocation6], 4294963200  ;;  %v629_v0 = vmov 0.0   ;;  %vm630_vm0 = vmmov 0   ;;  %v84_v1 = vld [vmem:[#allocation2 + $0x78] sm:$0xff]  ;;  %v83_v2 = vld [vmem:[#allocation2 + $0x70] sm:$0xff] }
  0x26   :  { %421 = vmatprep.subr.mxu0 %v629_v0  ;;  %453 = vmatprep.mubr.msk.f32.mxu0 %vm630_vm0, %v629_v0  ;;  %v82_v3 = vld [vmem:[#allocation2 + $0x68] sm:$0xff]  ;;  %v81_v4 = vld [vmem:[#allocation2 + $0x60] sm:$0xff]  ;;  %v178_v5 = vld [vmem:[#allocation5 + $0x78] sm:$0xff]  ;;  %s631_s21 = smov [#allocation8]  }
  0x27   :  { %456 = vmatprep.subr.mxu1 %v629_v0  ;;  %488 = vmatprep.mubr.msk.f32.mxu1 %vm630_vm0, %v629_v0  ;;  %v80_v6 = vld [vmem:[#allocation2 + $0x58] sm:$0xff]  ;;  %v177_v7 = vld [vmem:[#allocation5 + $0x70] sm:$0xff]  ;;  %v176_v8 = vld [vmem:[#allocation5 + $0x68] sm:$0xff]  ;;  %s357_s22 = sshll.u32 %s631_s21, 4  ;;  %s358_s22 = int_to_ptr.vmem [resolvable:$true] %s357_s22 }
  0x28   :  { %422 = vmatpush3.msra.mxu0 %v84_v1  ;;  %457 = vmatpush3.msra.mxu1 %v178_v5  ;;  %v79_v9 = vld [vmem:[#allocation2 + $0x50] sm:$0xff]  ;;  %v175_v10 = vld [vmem:[#allocation5 + $0x60] sm:$0xff]  ;;  %v78_v11 = vld [vmem:[#allocation2 + $0x48] sm:$0xff]  ;;  %s598_s23 = scalar_lea.vmem %s358_s22, 128  ;;  %p603_p2 = scmp.lt.s32.totalorder %s358_s22, %s358_s22 }
  0x29   :  { %423 = vmatprep.subr.mxu0 %v629_v0  ;;  %458 = vmatprep.subr.mxu1 %v629_v0  ;;  %v174_v12 = vld [vmem:[#allocation5 + $0x58] sm:$0xff]  ;;  %v77_v13 = vld [vmem:[#allocation2 + $0x40] sm:$0xff]  ;;  %v173_v14 = vld [vmem:[#allocation5 + $0x50] sm:$0xff]  ;;  %p599_p1 = scmp.ne.s32.totalorder %s358_s22, %s598_s23  ;;  %p604_p3 = scmp.lt.s32.totalorder %s598_s23, %s598_s23 }
  0x2a   :  { %424 = vmatpush3.msra.mxu0 %v83_v2  ;;  %459 = vmatpush3.msra.mxu1 %v177_v7  ;;  %v76_v15 = vld [vmem:[#allocation2 + $0x38] sm:$0xff]  ;;  %v172_v16 = vld [vmem:[#allocation5 + $0x48] sm:$0xff]  ;;  %v75_v17 = vld [vmem:[#allocation2 + $0x30] sm:$0xff] }
  0x2b   :  { %425 = vmatprep.subr.mxu0 %v629_v0  ;;  %460 = vmatprep.subr.mxu1 %v629_v0  ;;  %v74_v18 = vld [vmem:[#allocation2 + $0x28] sm:$0xff]  ;;  %v73_v19 = vld [vmem:[#allocation2 + $0x20] sm:$0xff]  ;;  %v72_v20 = vld [vmem:[#allocation2 + $0x18] sm:$0xff]  ;;  %p605_p4 = por %p604_p3, %p603_p2 }
  0x2c   :  { %426 = vmatpush3.msra.mxu0 %v82_v3  ;;  %461 = vmatpush3.msra.mxu1 %v176_v8  ;;  %v71_v21 = vld [vmem:[#allocation2 + $0x10] sm:$0xff]  ;;  %v70_v22 = vld [vmem:[#allocation2 + $0x8] sm:$0xff]  ;;  %v69_v23 = vld [vmem:[#allocation2] sm:$0xff] }
  0x2d   :  { %427 = vmatprep.subr.mxu0 %v629_v0  ;;  %462 = vmatprep.subr.mxu1 %v629_v0  ;;  %v68_v24 = vld [vmem:[%s750_s0] sm:$0xff]  ;;  %v170_v26 = vld [vmem:[#allocation5 + $0x38] sm:$0xff]  ;;  %v169_v27 = vld [vmem:[#allocation5 + $0x30] sm:$0xff]  ;;  %p606_p5 = pnand %p605_p4, %p599_p1 }
  0x2e   :  { %428 = vmatpush3.msra.mxu0 %v81_v4  ;;  %463 = vmatpush3.msra.mxu1 %v175_v10  ;;  %v171_v25 = vld [vmem:[#allocation5 + $0x40] sm:$0xff]  ;;  %v168_v28 = vld [vmem:[#allocation5 + $0x28] sm:$0xff]  ;;  %v166_v30 = vld [vmem:[#allocation5 + $0x18] sm:$0xff] }
  0x2f   :  { %429 = vmatprep.subr.mxu0 %v629_v0  ;;  %464 = vmatprep.subr.mxu1 %v629_v0  ;;  %v167_v29 = vld [vmem:[#allocation5 + $0x20] sm:$0xff]  ;;  %v165_v31 = vld [vmem:[#allocation5 + $0x10] sm:$0xff]  ;;  %v164_v32 = vld [vmem:[#allocation5 + $0x8] sm:$0xff] }
  0x30   :  { %430 = vmatpush3.msra.mxu0 %v80_v6  ;;  %465 = vmatpush3.msra.mxu1 %v174_v12  ;;  %v163_v33 = vld [vmem:[#allocation5] sm:$0xff]  ;;  %v272_v34 = vld [vmem:[#allocation7 + $0x78] sm:$0xff]  ;;  %v271_v35 = vld [vmem:[#allocation7 + $0x70] sm:$0xff] }
  0x31   :  { %431 = vmatprep.subr.mxu0 %v629_v0  ;;  %466 = vmatprep.subr.mxu1 %v629_v0  ;;  %v270_v36 = vld [vmem:[#allocation7 + $0x68] sm:$0xff]  ;;  %v269_v37 = vld [vmem:[#allocation7 + $0x60] sm:$0xff]  ;;  %v268_v38 = vld [vmem:[#allocation7 + $0x58] sm:$0xff] }
  0x32   :  { %432 = vmatpush3.msra.mxu0 %v79_v9  ;;  %467 = vmatpush3.msra.mxu1 %v173_v14  ;;  %v267_v39 = vld [vmem:[#allocation7 + $0x50] sm:$0xff]  ;;  %v266_v40 = vld [vmem:[#allocation7 + $0x48] sm:$0xff]  ;;  %v367_v41 = vld [vmem:[%s752_s2] ss:$0 sm:$0xff] }
  0x33   :  { %433 = vmatprep.subr.mxu0 %v629_v0  ;;  %468 = vmatprep.subr.mxu1 %v629_v0  ;;  %v265_v46 = vld [vmem:[#allocation7 + $0x40] sm:$0xff]  ;;  %v264_v47 = vld [vmem:[#allocation7 + $0x38] sm:$0xff]  ;;  %v263_v48 = vld [vmem:[#allocation7 + $0x30] sm:$0xff] }
  0x34   :  { %434 = vmatpush3.msra.mxu0 %v78_v11  ;;  %469 = vmatpush3.msra.mxu1 %v172_v16  ;;  %v262_v49 = vld [vmem:[#allocation7 + $0x28] sm:$0xff]  ;;  %v261_v50 = vld [vmem:[#allocation7 + $0x20] sm:$0xff]  ;;  %v260_v51 = vld [vmem:[#allocation7 + $0x18] sm:$0xff] }
  0x35   :  { %435 = vmatprep.subr.mxu0 %v629_v0  ;;  %470 = vmatprep.subr.mxu1 %v629_v0  ;;  %v259_v52 = vld [vmem:[#allocation7 + $0x10] sm:$0xff]  ;;  %v258_v53 = vld [vmem:[#allocation7 + $0x8] sm:$0xff]  ;;  %v257_v54 = vld [vmem:[#allocation7] sm:$0xff] }
  0x36   :  { %436 = vmatpush3.msra.mxu0 %v77_v13  ;;  %471 = vmatpush3.msra.mxu1 %v171_v25  ;;  %v368_v55 = vld [vmem:[%s754_s4] ss:$0 sm:$0xff] }
  0x37   :  { %437 = vmatprep.subr.mxu0 %v629_v0  ;;  %472 = vmatprep.subr.mxu1 %v629_v0  ;;  %v369_v60 = vld [vmem:[%s756_s6] ss:$0 sm:$0xff] }
  0x38   :  { %438 = vmatpush3.msra.mxu0 %v76_v15  ;;  %473 = vmatpush3.msra.mxu1 %v170_v26 }
  0x39   :  { %439 = vmatprep.subr.mxu0 %v629_v0  ;;  %474 = vmatprep.subr.mxu1 %v629_v0 }
  0x3a   :  { %440 = vmatpush3.msra.mxu0 %v75_v17  ;;  %475 = vmatpush3.msra.mxu1 %v169_v27 }
  0x3b   :  { %441 = vmatprep.subr.mxu0 %v629_v0  ;;  %476 = vmatprep.subr.mxu1 %v629_v0 }
  0x3c   :  { %442 = vmatpush3.msra.mxu0 %v74_v18  ;;  %477 = vmatpush3.msra.mxu1 %v168_v28 }
  0x3d   :  { %443 = vmatprep.subr.mxu0 %v629_v0  ;;  %478 = vmatprep.subr.mxu1 %v629_v0 }
  0x3e   :  { %444 = vmatpush3.msra.mxu0 %v73_v19  ;;  %479 = vmatpush3.msra.mxu1 %v167_v29 }
  0x3f   :  { %445 = vmatprep.subr.mxu0 %v629_v0  ;;  %480 = vmatprep.subr.mxu1 %v629_v0 }
  0x40   :  { %446 = vmatpush3.msra.mxu0 %v72_v20  ;;  %481 = vmatpush3.msra.mxu1 %v166_v30 }
  0x41   :  { %447 = vmatprep.subr.mxu0 %v629_v0  ;;  %482 = vmatprep.subr.mxu1 %v629_v0 }
  0x42   :  { %448 = vmatpush3.msra.mxu0 %v71_v21  ;;  %483 = vmatpush3.msra.mxu1 %v165_v31 }
  0x43   :  { %449 = vmatprep.subr.mxu0 %v629_v0  ;;  %484 = vmatprep.subr.mxu1 %v629_v0 }
  0x44   :  { %450 = vmatpush3.msra.mxu0 %v70_v22  ;;  %485 = vmatpush3.msra.mxu1 %v164_v32 }
  0x45   :  { %451 = vmatprep.subr.mxu0 %v629_v0  ;;  %486 = vmatprep.subr.mxu1 %v629_v0 }
  0x46   :  { %452 = vmatpush3.msra.mxu0 %v69_v23  ;;  %487 = vmatpush3.msra.mxu1 %v163_v33 }
  0x47   :  { %454 = vmatmul.mubr.f32.vlgmr.msra.gmra.mxu0 %v68_v24  ;;  %491 = vmatprep.subr.mxu0 %v629_v0 }
  0x48   :  { %523 = vmatprep.mubr.msk.f32.mxu0 %vm630_vm0, %v629_v0  ;;  %492 = vmatpush3.msra.mxu0 %v272_v34 }
  0x49   :  { %493 = vmatprep.subr.mxu0 %v629_v0 }
  0x4a   :  { %494 = vmatpush3.msra.mxu0 %v271_v35 }
  0x4b   :  { %495 = vmatprep.subr.mxu0 %v629_v0 }
  0x4c   :  { %496 = vmatpush3.msra.mxu0 %v270_v36 }
  0x4d   :  { %497 = vmatprep.subr.mxu0 %v629_v0 }
  0x4e   :  { %498 = vmatpush3.msra.mxu0 %v269_v37 }
  0x4f   :  { %499 = vmatprep.subr.mxu0 %v629_v0 }
  0x50   :  { %500 = vmatpush3.msra.mxu0 %v268_v38 }
  0x51   :  { %501 = vmatprep.subr.mxu0 %v629_v0 }
  0x52   :  { %502 = vmatpush3.msra.mxu0 %v267_v39 }
  0x53   :  { %503 = vmatprep.subr.mxu0 %v629_v0 }
  0x54   :  { %504 = vmatpush3.msra.mxu0 %v266_v40 }
  0x55   :  { %505 = vmatprep.subr.mxu0 %v629_v0 }
  0x56   :  { %506 = vmatpush3.msra.mxu0 %v265_v46 }
  0x57   :  { %507 = vmatprep.subr.mxu0 %v629_v0 }
  0x58   :  { %508 = vmatpush3.msra.mxu0 %v264_v47 }
  0x59   :  { %509 = vmatprep.subr.mxu0 %v629_v0 }
  0x5a   :  { %510 = vmatpush3.msra.mxu0 %v263_v48 }
  0x5b   :  { %511 = vmatprep.subr.mxu0 %v629_v0 }
  0x5c   :  { %512 = vmatpush3.msra.mxu0 %v262_v49 }
  0x5d   :  { %513 = vmatprep.subr.mxu0 %v629_v0 }
  0x5e   :  { %514 = vmatpush3.msra.mxu0 %v261_v50 }
  0x5f   :  { %515 = vmatprep.subr.mxu0 %v629_v0 }
  0x60   :  { %516 = vmatpush3.msra.mxu0 %v260_v51 }
  0x61   :  { %517 = vmatprep.subr.mxu0 %v629_v0 }
  0x62   :  { %518 = vmatpush3.msra.mxu0 %v259_v52 }
  0x63   :  { %519 = vmatprep.subr.mxu0 %v629_v0 }
  0x64   :  { %520 = vmatpush3.msra.mxu0 %v258_v53 }
  0x65   :  { %521 = vmatprep.subr.mxu0 %v629_v0 }
  0x66   :  { %522 = vmatpush3.msra.mxu0 %v257_v54 }
 0x107   :  { %v158_v42 = vpop.f32.mrf.mxu0 }
 0x108   :  { %v159_v43 = vadd.f32 %v367_v41, %v158_v42 }
 0x109   :  { %v455_v44 = vpop.f32.mrf.mxu0 }
 0x10a   :  { %534 = vtanh.f32 %v159_v43 }
 0x117   :  { %v535_v45 = vpop.eup %534 }
 0x118   :  { %489 = vmatmul.mubr.f32.vlgmr.msra.gmra.mxu1 %v535_v45 }
 0x1d8   :  { %v252_v56 = vpop.f32.mrf.mxu1 }
 0x1d9   :  { %v253_v57 = vadd.f32 %v368_v55, %v252_v56 }
 0x1da   :  { %v490_v58 = vpop.f32.mrf.mxu1 }
 0x1db   :  { %536 = vtanh.f32 %v253_v57 }
 0x1e8   :  { %v537_v59 = vpop.eup %536 }
 0x1e9   :  { %524 = vmatmul.mubr.f32.vlgmr.msra.gmra.mxu0 %v537_v59 }
 0x2a9   :  { %v346_v61 = vpop.f32.mrf.mxu0 }
 0x2aa   :  { %v347_v62 = vadd.f32 %v369_v60, %v346_v61 }
 0x2ab   :  { %v525_v63 = vpop.f32.mrf.mxu0 }
 0x2ac   :  { %350 = vst [vmem:[#allocation8] sm:$0xff] %v347_v62 }
 0x2ad   :  { %609 = shalt.err (!%p606_p5)
}
 0x2ae   :  { %360 = dma.vmem_to_hbm [thread:$0]  %s358_s22, 128, %s757_s7, [#allocation4]  }
 0x2af   :  { %622 = dma.done.wait [#allocation4], 128  }
 0x2b0   :  { %623 = vsyncadd [#allocation4], 4294967168 }
 0x2b1   :  { %364 = vsyncpa [#allocation3], 1 }
 0x2b2   :  { %365 = vsyncpa [#allocation6], 1 }
 0x2b3   :  { %366 = vsyncpa [#allocation4], 1 }

</bundles_post_ra>
